<compile_context>
chip_gen: v6e
topology: v6e:2x2x1
jax: 0.10.0
libtpu: 0.0.40
codegen_flags: <defaults>
</compile_context>

<pallas_src>
import functools

import numpy as np
import jax
import jax.numpy as jnp
from jax.experimental import pallas as pl
from jax.experimental.pallas import tpu as pltpu

VARIANCE = (0.1, 0.2)   # cfg['variance'] (standard SSD)

# One lane-dense tile per grid step unless P is enormous; 32768 keeps the
# per-step footprint (loc + priors + boxes, double-buffered) around ~3 MB.
_MAX_PT = 32768


def _decode_kernel(loc_ref, prior_ref, boxes_ref, *, v0, v1):
    """Decode one [4, PT] SoA tile (components on sublanes, priors on lanes)."""
    loc = loc_ref[...].astype(jnp.float32)      # [4, PT]  rows: dx, dy, dw, dh
    pr = prior_ref[...].astype(jnp.float32)     # [4, PT]  rows: cx, cy, w, h

    cxcy = pr[0:2, :] + loc[0:2, :] * (v0 * pr[2:4, :])   # [2, PT]
    wh = pr[2:4, :] * jnp.exp(loc[2:4, :] * v1)           # [2, PT]
    mins = cxcy - 0.5 * wh                                # [2, PT]

    # Lane-dense stores (full 128 lanes per vst; only sublane-sliced).
    boxes_ref[0:2, :] = mins            # x1, y1
    boxes_ref[2:4, :] = mins + wh       # x2, y2


def _decode_boxes(loc_soa, priors_soa, variance):
    """loc_soa: [B, 4, P], priors_soa: [4, P] -> decoded boxes [B, 4, P] (f32)."""
    B, _, P = loc_soa.shape

    # Whole-P tile when it fits comfortably (it always does for SSD-sized P);
    # otherwise 128-divisible tiles so the ragged last block stays legal.
    PT = P if P <= _MAX_PT else _MAX_PT
    T = pl.cdiv(P, PT)

    kernel = functools.partial(_decode_kernel, v0=float(variance[0]),
                               v1=float(variance[1]))

    return pl.pallas_call(
        kernel,
        out_shape=jax.ShapeDtypeStruct((B, 4, P), jnp.float32),
        grid=(T, B),
        in_specs=[
            # loc: batch squeezed, components on sublanes, priors on lanes.
            pl.BlockSpec((None, 4, PT), lambda t, b: (b, 0, t)),
            # priors: block index depends only on the outer axis -> reused
            # across the inner batch loop without re-DMA.
            pl.BlockSpec((4, PT), lambda t, b: (0, t)),
        ],
        out_specs=pl.BlockSpec((None, 4, PT), lambda t, b: (b, 0, t)),
        compiler_params=pltpu.CompilerParams(
            dimension_semantics=("parallel", "parallel")),
    )(loc_soa, priors_soa)


def _select(scores, boxes_soa, top_k, conf_thresh):
    """Per-(batch, class) threshold + top-k selection (data-dependent; plain JAX).

    scores: [B, C, P] raw class scores; boxes_soa: [B, 4, P] decoded boxes.
    Returns [B, C, top_k, 5] rows of (score, x1, y1, x2, y2), zero padded.
    """
    B, C, P = scores.shape
    mask = scores > conf_thresh                        # [B, C, P]
    count = jnp.sum(mask, axis=-1, dtype=jnp.int32)    # [B, C]

    neg_inf = jnp.float32(-jnp.inf)
    # NOTE: float index key is exact while P < 2^24 (SSD P ~ 8732, fine).
    idx_key = -jnp.arange(P, dtype=jnp.float32)

    # count >  top_k : take top_k by score (lax.top_k breaks ties toward lower
    #                  index, matching a stable argsort of -scores).
    # count <= top_k : keep all passing priors in original prior order.
    key_topk = jnp.where(mask, scores, neg_inf)
    key_order = jnp.where(mask, idx_key, neg_inf)
    key = jnp.where((count > top_k)[..., None], key_topk, key_order)

    _, sel = jax.lax.top_k(key, top_k)                 # [B, C, top_k]

    valid = jnp.arange(top_k) < jnp.minimum(count, top_k)[..., None]   # [B,C,K]

    sel_scores = jnp.take_along_axis(scores, sel, axis=-1)
    sel_scores = jnp.where(valid, sel_scores, 0.0)

    # Gather boxes on the last (prior) axis of the SoA layout -- no
    # transpose-back of the full decoded-box tensor.
    idx = jnp.broadcast_to(sel.reshape(B, 1, C * top_k), (B, 4, C * top_k))
    sel_boxes = jnp.take_along_axis(boxes_soa, idx, axis=-1)    # [B, 4, C*K]
    sel_boxes = jnp.transpose(sel_boxes.reshape(B, 4, C, top_k),
                              (0, 2, 3, 1))                     # [B, C, K, 4]
    sel_boxes = jnp.where(valid[..., None], sel_boxes, 0.0)

    return jnp.concatenate([sel_scores[..., None], sel_boxes], axis=-1)


@functools.partial(jax.jit, static_argnames=("num_classes", "top_k",
                                             "conf_thresh", "variance"))
def detect_forward(loc_data, conf_data, prior_data, *, num_classes, top_k,
                   conf_thresh, variance=VARIANCE):
    """loc_data: [B, P, 4], conf_data: [B*P, C], prior_data: [1, P, 4]."""
    B, P, _ = loc_data.shape
    C = num_classes

    # Small layout plumbing (~B*P*4 floats) so the kernel is lane-dense.
    loc_soa = jnp.transpose(loc_data, (0, 2, 1))          # [B, 4, P]
    priors_soa = jnp.transpose(prior_data[0], (1, 0))     # [4, P]

    boxes = _decode_boxes(loc_soa, priors_soa, variance)  # [B, 4, P] f32

    # Priors-last layout as required by lax.top_k; the threshold mask is fused
    # into the key computation (no materialized masked-score copy).
    scores = jnp.transpose(conf_data.reshape(B, P, C), (0, 2, 1)).astype(jnp.float32)

    return _select(scores, boxes, top_k, float(conf_thresh))   # [B, C, K, 5]


def _numpy_reference(loc, conf, priors, C, top_k, conf_thresh, variance):
    """Direct mirror of the PyTorch forward (arm/refinedet path disabled)."""
    B, P, _ = loc.shape
    pr = priors[0]
    out = np.zeros((B, C, top_k, 5), np.float32)
    conf_preds = conf.reshape(B, P, C).transpose(0, 2, 1)
    for i in range(B):
        cxcy = pr[:, :2] + loc[i, :, :2] * variance[0] * pr[:, 2:]
        wh = pr[:, 2:] * np.exp(loc[i, :, 2:] * variance[1])
        mins = cxcy - wh / 2.0
        boxes = np.concatenate([mins, mins + wh], axis=1)
        for cl in range(C):
            scores_all = conf_preds[i, cl]
            m = scores_all > conf_thresh
            scores = scores_all[m]
            bxs = boxes[m]
            if scores.size <= top_k:
                count = scores.size
            else:
                count = top_k
                idx = np.argsort(-scores, kind="stable")[:top_k]
                scores = scores[idx]
                bxs = bxs[idx]
            if count > 0:
                out[i, cl, :count] = np.concatenate(
                    [scores[:count, None], bxs[:count]], axis=1)
    return out


if __name__ == "__main__":
    B, P, C, TOP_K = 2, 256, 8, 16
    CONF_THRESH = 0.2
    NMS_THRESH = 0.45   # stored by __init__ but unused by forward()

    key = jax.random.PRNGKey(0)
    k1, k2, k3, k4 = jax.random.split(key, 4)

    loc = 0.5 * jax.random.normal(k1, (B, P, 4), jnp.float32)
    conf = jax.nn.softmax(jax.random.normal(k2, (B * P, C), jnp.float32), axis=-1)
    centers = jax.random.uniform(k3, (P, 2), jnp.float32, 0.1, 0.9)
    sizes = jax.random.uniform(k4, (P, 2), jnp.float32, 0.05, 0.3)
    priors = jnp.concatenate([centers, sizes], axis=1)[None]   # [1, P, 4]

    out = detect_forward(loc, conf, priors, num_classes=C, top_k=TOP_K,
                         conf_thresh=CONF_THRESH)
    out = jax.block_until_ready(out)
    assert out.shape == (B, C, TOP_K, 5) and out.dtype == jnp.float32

    ref = _numpy_reference(np.asarray(loc), np.asarray(conf), np.asarray(priors),
                           C, TOP_K, CONF_THRESH, VARIANCE)
    np.testing.assert_allclose(np.asarray(out), ref, rtol=2e-5, atol=2e-5)
    print("KERNEL_OK")
</pallas_src>

<mosaic_0001>
module attributes {stable_mosaic.version = 11 : i64} {
  func.func @_decode_kernel(%arg0: i32, %arg1: i32, %arg2: memref<1x4x256xf32, #tpu.memory_space<vmem>>, %arg3: memref<4x256xf32, #tpu.memory_space<vmem>>, %arg4: memref<1x4x256xf32, #tpu.memory_space<vmem>>) attributes {dimension_semantics = [#tpu.dimension_semantics<parallel>, #tpu.dimension_semantics<parallel>], iteration_bounds = array<i64: 1, 2>, scalar_prefetch = 0 : i64, scratch_operands = 0 : i64, tpu.core_type = #tpu.core_type<tc>, window_params = [{transform_indices = @transform_0, window_bounds = array<i64: 1, 4, 256>}, {transform_indices = @transform_1, window_bounds = array<i64: 4, 256>}, {transform_indices = @transform_2, window_bounds = array<i64: 1, 4, 256>}]} {
    %c0 = arith.constant 0 : index
    %c0_0 = arith.constant 0 : index
    %c0_1 = arith.constant 0 : index
    %0 = vector.load %arg2[%c0, %c0_0, %c0_1] : memref<1x4x256xf32, #tpu.memory_space<vmem>>, vector<1x4x256xf32>
    %1 = vector.shape_cast %0 : vector<1x4x256xf32> to vector<4x256xf32>
    %c0_2 = arith.constant 0 : index
    %c0_3 = arith.constant 0 : index
    %2 = vector.load %arg3[%c0_2, %c0_3] : memref<4x256xf32, #tpu.memory_space<vmem>>, vector<4x256xf32>
    %3 = vector.extract_strided_slice %2 {offsets = [0, 0], sizes = [2, 256], strides = [1, 1]} : vector<4x256xf32> to vector<2x256xf32>
    %4 = vector.extract_strided_slice %1 {offsets = [0, 0], sizes = [2, 256], strides = [1, 1]} : vector<4x256xf32> to vector<2x256xf32>
    %5 = vector.extract_strided_slice %2 {offsets = [2, 0], sizes = [2, 256], strides = [1, 1]} : vector<4x256xf32> to vector<2x256xf32>
    %cst = arith.constant 1.000000e-01 : f32
    %6 = vector.broadcast %cst : f32 to vector<2x256xf32>
    %7 = arith.mulf %6, %5 : vector<2x256xf32>
    %8 = arith.mulf %4, %7 : vector<2x256xf32>
    %9 = arith.addf %3, %8 : vector<2x256xf32>
    %10 = vector.extract_strided_slice %2 {offsets = [2, 0], sizes = [2, 256], strides = [1, 1]} : vector<4x256xf32> to vector<2x256xf32>
    %11 = vector.extract_strided_slice %1 {offsets = [2, 0], sizes = [2, 256], strides = [1, 1]} : vector<4x256xf32> to vector<2x256xf32>
    %cst_4 = arith.constant 2.000000e-01 : f32
    %12 = vector.broadcast %cst_4 : f32 to vector<2x256xf32>
    %13 = arith.mulf %11, %12 : vector<2x256xf32>
    %14 = math.exp %13 : vector<2x256xf32>
    %15 = arith.mulf %10, %14 : vector<2x256xf32>
    %cst_5 = arith.constant 5.000000e-01 : f32
    %16 = vector.broadcast %cst_5 : f32 to vector<2x256xf32>
    %17 = arith.mulf %16, %15 : vector<2x256xf32>
    %18 = arith.subf %9, %17 : vector<2x256xf32>
    %c0_6 = arith.constant 0 : index
    %c0_7 = arith.constant 0 : index
    %c0_8 = arith.constant 0 : index
    %19 = vector.load %arg4[%c0_6, %c0_7, %c0_8] : memref<1x4x256xf32, #tpu.memory_space<vmem>>, vector<1x2x256xf32>
    %20 = vector.shape_cast %19 : vector<1x2x256xf32> to vector<2x256xf32>
    %21 = vector.shape_cast %18 : vector<2x256xf32> to vector<1x2x256xf32>
    tpu.vector_store %arg4[%c0_6, %c0_7, %c0_8], %21 {strides = array<i32>} : memref<1x4x256xf32, #tpu.memory_space<vmem>>, vector<1x2x256xf32>,
    %22 = arith.addf %18, %15 : vector<2x256xf32>
    %c0_9 = arith.constant 0 : index
    %c2 = arith.constant 2 : index
    %c0_10 = arith.constant 0 : index
    %23 = vector.load %arg4[%c0_9, %c2, %c0_10] : memref<1x4x256xf32, #tpu.memory_space<vmem>>, vector<1x2x256xf32>
    %24 = vector.shape_cast %23 : vector<1x2x256xf32> to vector<2x256xf32>
    %25 = vector.shape_cast %22 : vector<2x256xf32> to vector<1x2x256xf32>
    tpu.vector_store %arg4[%c0_9, %c2, %c0_10], %25 {strides = array<i32>} : memref<1x4x256xf32, #tpu.memory_space<vmem>>, vector<1x2x256xf32>,
    return
  }
  func.func @transform_0(%arg0: i32, %arg1: i32) -> (i32, i32, i32) {
    %c0_i32 = arith.constant 0 : i32
    %c0_i32_0 = arith.constant 0 : i32
    return %arg1, %c0_i32, %arg0 : i32, i32, i32
  }
  func.func @transform_1(%arg0: i32, %arg1: i32) -> (i32, i32) {
    %c0_i32 = arith.constant 0 : i32
    %c0_i32_0 = arith.constant 0 : i32
    return %c0_i32, %arg0 : i32, i32
  }
  func.func @transform_2(%arg0: i32, %arg1: i32) -> (i32, i32, i32) {
    %c0_i32 = arith.constant 0 : i32
    %c0_i32_0 = arith.constant 0 : i32
    return %arg1, %c0_i32, %arg0 : i32, i32, i32
  }
}

</mosaic_0001>

<bundles_post_ra>
// kernel: detect_forward.1
= control target key start
LH: loop header
LB: loop body
LE: loop exit
PB: predicated region body
PF: predicated region fallthrough
CT: control target
= control target key end

     0   :  { %s418_s9 = smov 0   ;;  %s420_s10 = smov 0   ;;  %s454_s0 = inlined_call_operand.vmem [shape: f32[2,4,256], index: 0, kind: input, shape index: {}]   ;;  %s455_s1 = inlined_call_operand.vmem [shape: f32[4,256], index: 1, kind: input, shape index: {}]   ;;  %s456_s2 = inlined_call_operand.vmem [shape: f32[2,4,256], index: 2, kind: output, shape index: {}]  }
   0x1   :  { %s422_s11 = smov 0  }
   0x2 LB: > { %s21_s12 = sadd.s32 1, %s397_s10  ;;  %p341_p0 = scmp.ge.s32.totalorder %s401_s11, 1  ;;  %s401_s11 = sphi %s422_s11, %s12_s11   ;;  %s397_s10 = sphi %s420_s10, %s458_s10   ;;  %s393_s9 = sphi %s418_s9, %s457_s9  }
   0x3   : > { %p22_p1 = scmp.ge.s32.totalorder %s21_s12, 2  ;;  %p144_p2 = scmp.lt.s32.totalorder %s401_s11, 3 }
   0x5   : > { %s460_s12 = smov (%p22_p1, %s21_s12), 0  ;;  %p145_p3 = pnand %p341_p0, %p144_p2 }
   0x6   : > { %p180_p4 = scmp.lt.s32.totalorder (!%p145_p3), %s393_s9, 1 }
   0x7   : > { %148 = sbr.rel (%p145_p3) target bundleno = 47 (0x2f), region = 28 }
   0xc   : > { %s462_s9 = smov (!%p180_p4, %s393_s9), 1  ;;  %v206_v3 = vld [vmem:[%s455_s1] sm:$0xff] }
   0xd   : > { %s351_s13 = sshll.u32 %s462_s9, 3  ;;  %v207_v4 = vmul.f32 0.1, %v206_v3 }
   0xe   : > { %s187_s16 = scalar_lea.vmem %s454_s0, %s351_s13  ;;  %s203_s21 = scalar_lea.vmem %s456_s2, %s351_s13 }
   0xf   : > { %v205_v0 = vld [vmem:[%s187_s16] sm:$0xff]  ;;  %v346_v5 = vrot.slane %v207_v4, 10 }
  0x10   : > { %v214_v1 = vmul.f32 0.2, %v205_v0 }
  0x11   : > { %v212_v6 = vmul.f32 %v346_v5, %v205_v0 }
  0x12   : > { %v215_v2 = vmul.f32 1.442695, %v214_v1 }
  0x13   : > { %v213_v9 = vadd.f32 %v212_v6, %v206_v3 }
  0x14   : > { %377 = vpow2.f32 %v215_v2 }
  0x21   : > { %v378_v7 = vpop.eup %377 }
  0x22   : > { %v217_v8 = vmul.f32 %v378_v7, %v206_v3 }
  0x24   : > { %v218_v10 = vmul.f32 0.5, %v217_v8  ;;  %v348_v12 = vrot.slane %v217_v8, 10 }
  0x26   : > { %v347_v11 = vrot.slane %v218_v10, 10 }
  0x28   : > { %v223_v13 = vsub.f32 %v213_v9, %v347_v11 }
  0x2a   : > { %224 = vst [vmem:[%s203_s21] sm:$0x33] %v223_v13  ;;  %v229_v14 = vadd.f32 %v348_v12, %v223_v13 }
  0x2c   : > { %v231_v15 = vrot.slane %v229_v14, 6 }
  0x2e   : > { %233 = vst [vmem:[%s203_s21] sm:$0xcc] %v231_v15 }
  0x2f PF: > { %s12_s11 = sadd.s32 1, %s401_s11   ;;  %s457_s9 = smov %s397_s10 }
  0x30   : > { %p9_p5 = scmp.ge.s32.totalorder %s12_s11, 4   ;;  %s458_s10 = smov %s460_s12 }
  0x32   :  { %11 = sbr.rel (!%p9_p5) target bundleno = 2 (0x2), region = 61 }

</bundles_post_ra>
